<compile_context>
chip_gen: v5e
topology: v5e:2x2
jax: 0.10.0
libtpu: 0.0.40
codegen_flags: <defaults>
</compile_context>

<pallas_src>
import numpy as np
import jax
import jax.numpy as jnp
from jax.experimental import pallas as pl
from jax.experimental.pallas import tpu as pltpu


# ----------------------------------------------------------------------------
# PyTorch AdaptiveAvgPool2d(3) pooling matrix (row-major 3x3 bins).
# bin i over size n: [floor(i*n/3), ceil((i+1)*n/3))  (never empty for n >= 1).
# ----------------------------------------------------------------------------
def adaptive_pool3_matrix(H, W):
    def bounds(n, i):
        return (i * n) // 3, -(-((i + 1) * n) // 3)  # floor, ceil

    pm = np.zeros((H * W, 9), dtype=np.float32)
    for i in range(3):
        hs, he = bounds(H, i)
        for j in range(3):
            ws, we = bounds(W, j)
            inv = 1.0 / float((he - hs) * (we - ws))
            for h in range(hs, he):
                for w in range(ws, we):
                    pm[h * W + w, i * 3 + j] = inv
    return pm


# ----------------------------------------------------------------------------
# Pallas kernel: one batch tile (TB rows) per grid step, three MXU matmuls.
# ----------------------------------------------------------------------------
def _route_func_kernel(x_ref, wc_ref, wdw_ref, w3t_ref, o_ref):
    # (TB, C*HW) bf16 @ (C*HW, S*9) bf16 -> f32:
    # fused [pool1 | pool3] + channel concat + first 1x1 conv, then ReLU.
    y1 = jnp.maximum(
        jnp.dot(x_ref[...], wc_ref[...], preferred_element_type=jnp.float32),
        0.0)                                                      # (TB, S*9) f32
    # Depthwise 3x3 (9 pooled positions -> 1) as block-diagonal matmul, ReLU.
    y2 = jnp.maximum(
        jnp.dot(y1, wdw_ref[...], preferred_element_type=jnp.float32),
        0.0)                                                      # (TB, S) f32
    # Final 1x1 conv (weight pre-transposed + zero-padded to 128 lanes) + sigmoid.
    o_ref[...] = jax.nn.sigmoid(
        jnp.dot(y2, w3t_ref[...], preferred_element_type=jnp.float32))  # (TB, 128)


# ----------------------------------------------------------------------------
# Wrapper
# ----------------------------------------------------------------------------
def route_func_pallas(x, w1, wdw, w3, *, max_batch_tile=512):
    """x: (B, C, H, W) f32 NCHW.  w1: (S, 2C, 1, 1), wdw: (S, 1, 3, 3),
    w3: (EO, S, 1, 1).  Returns (B, EO, 1, 1), matching the PyTorch module."""
    B, C, H, W = x.shape
    S = w1.shape[0]
    EO = w3.shape[0]
    HW = H * W
    CHW = C * HW
    S9 = S * 9
    EO_pad = -(-EO // 128) * 128            # lane-dense output store

    # ---- Fold pool(1)/pool(3)/concat/conv1 into one (C*HW, S*9) matrix. ----
    pm9 = jnp.asarray(adaptive_pool3_matrix(H, W))                  # (HW, 9)
    w1_full = w1.reshape(S, 2 * C).astype(jnp.float32)
    w1a = w1_full[:, :C]     # acts on broadcast global mean (a1)
    w1b = w1_full[:, C:]     # acts on 3x3 pooled values (a3)
    # Wc[c*HW+hw, s*9+p] = w1b[s,c]*pm9[hw,p] + w1a[s,c]/HW   (then cast bf16)
    wc = (w1b.T[:, None, :, None] * pm9[None, :, None, :]
          + w1a.T[:, None, :, None] * (1.0 / HW)).reshape(CHW, S9)
    wc = wc.astype(jnp.bfloat16)

    # ---- Depthwise 3x3 as block-diagonal (S*9, S), f32 (tiny). ----
    wdw_flat = wdw.reshape(S, 9).astype(jnp.float32)
    wdw_bd = (wdw_flat[:, :, None]
              * jnp.eye(S, dtype=jnp.float32)[:, None, :]).reshape(S9, S)

    # ---- Final 1x1 conv, pre-transposed + zero-padded so EO_pad=128 lanes. ----
    w3t = jnp.zeros((S, EO_pad), jnp.float32).at[:, :EO].set(
        w3.reshape(EO, S).astype(jnp.float32).T)

    # ---- Batch tiling.  No wrapper-side pad of x: ragged last grid block. ----
    B8 = -(-B // 8) * 8
    if B8 <= 8:
        TB = 8                                   # single (partial) block
    else:
        # >=2 grid blocks so v7x's two TensorCores both get work.
        TB = min(max_batch_tile, -(-(B8 // 2) // 8) * 8)
    # Keep x double-buffer (bf16) + resident Wc under a ~24 MiB VMEM budget
    # (safe for v5e 16 MiB-default/128 MiB and v7x 32 MiB-default/64 MiB).
    x_row_bytes = 2 * CHW
    wc_bytes = CHW * S9 * 2
    avail = max((24 << 20) - wc_bytes, 2 * 8 * x_row_bytes)
    TB = min(TB, max(8, (avail // (2 * x_row_bytes)) // 8 * 8))

    n_blocks = pl.cdiv(B, TB)
    rows = n_blocks * TB

    x_flat = x.reshape(B, CHW).astype(jnp.bfloat16)   # bf16 halves the x stream

    vmem_need = (2 * TB * CHW * 2            # x double buffer (bf16)
                 + CHW * S9 * 2              # Wc single buffer (bf16)
                 + S9 * S * 4 + S * EO_pad * 4   # tiny f32 weights
                 + 2 * TB * EO_pad * 4)      # output double buffer (f32)
    vmem_limit = min(64 << 20, max(16 << 20, 2 * vmem_need + (4 << 20)))

    flops = 2 * rows * (CHW * S9 + S9 * S + S * EO_pad)
    bytes_accessed = (2 * (rows * CHW + CHW * S9)
                      + 4 * (S9 * S + S * EO_pad + rows * EO_pad))
    cost = pl.CostEstimate(flops=flops, transcendentals=rows * EO_pad,
                           bytes_accessed=bytes_accessed)

    out = pl.pallas_call(
        _route_func_kernel,
        out_shape=jax.ShapeDtypeStruct((B, EO_pad), jnp.float32),
        grid=(n_blocks,),
        in_specs=[
            pl.BlockSpec((TB, CHW), lambda b: (b, 0)),
            # Grid-invariant weights: single-buffered (no second VMEM copy).
            pl.BlockSpec((CHW, S9), lambda b: (0, 0),
                         pipeline_mode=pl.Buffered(1)),
            pl.BlockSpec((S9, S), lambda b: (0, 0),
                         pipeline_mode=pl.Buffered(1)),
            pl.BlockSpec((S, EO_pad), lambda b: (0, 0),
                         pipeline_mode=pl.Buffered(1)),
        ],
        out_specs=pl.BlockSpec((TB, EO_pad), lambda b: (b, 0)),
        compiler_params=pltpu.CompilerParams(
            dimension_semantics=("parallel",),
            vmem_limit_bytes=vmem_limit),
        cost_estimate=cost,
    )(x_flat, wc, wdw_bd, w3t)

    return out[:, :EO].reshape(B, EO, 1, 1)


# ----------------------------------------------------------------------------
# Pure-JAX reference (faithful to the PyTorch module; independent pooling, f32).
# ----------------------------------------------------------------------------
def route_func_ref(x, w1, wdw, w3):
    B, C, H, W = x.shape
    S = w1.shape[0]
    EO = w3.shape[0]

    def bounds(n, i):
        return (i * n) // 3, -(-((i + 1) * n) // 3)

    a1 = jnp.mean(x, axis=(2, 3))                                   # (B, C)
    rows = []
    for i in range(3):
        hs, he = bounds(H, i)
        cols = []
        for j in range(3):
            ws, we = bounds(W, j)
            cols.append(jnp.mean(x[:, :, hs:he, ws:we], axis=(2, 3)))
        rows.append(jnp.stack(cols, axis=-1))
    a3 = jnp.stack(rows, axis=-2).reshape(B, C, 9)                  # (B, C, 9)
    a1b = jnp.broadcast_to(a1[:, :, None], a3.shape)
    att = jnp.concatenate([a1b, a3], axis=1)                        # (B, 2C, 9)

    y1 = jnp.maximum(jnp.einsum("sc,bcp->bsp", w1.reshape(S, 2 * C), att), 0.0)
    y2 = jnp.maximum(jnp.sum(y1 * wdw.reshape(1, S, 9), axis=-1), 0.0)  # (B, S)
    out = jax.nn.sigmoid(jnp.einsum("os,bs->bo", w3.reshape(EO, S), y2))
    return out.reshape(B, EO, 1, 1)


if __name__ == "__main__":
    # Module hyper-parameters (consistent with the module's __init__).
    in_channels, out_channels = 4, 4
    num_experts, reduction = 3, 16
    squeeze_channels = max(in_channels // reduction, reduction)     # = 16
    B, H, W = 2, 16, 16
    EO = num_experts * out_channels                                 # = 12

    key = jax.random.PRNGKey(0)
    kx, k1, k2, k3 = jax.random.split(key, 4)

    x = jax.random.normal(kx, (B, in_channels, H, W), dtype=jnp.float32)
    w1 = jax.random.normal(k1, (squeeze_channels, 2 * in_channels, 1, 1),
                           dtype=jnp.float32) * 0.1
    wdw = jax.random.normal(k2, (squeeze_channels, 1, 3, 3),
                            dtype=jnp.float32) * 0.1
    w3 = jax.random.normal(k3, (EO, squeeze_channels, 1, 1),
                           dtype=jnp.float32) * 0.1

    out = jax.block_until_ready(route_func_pallas(x, w1, wdw, w3))
    ref = jax.block_until_ready(route_func_ref(x, w1, wdw, w3))

    assert out.shape == (B, EO, 1, 1), out.shape
    # bf16 first matmul -> relaxed tolerance (routing-gate sigmoid output).
    np.testing.assert_allclose(np.asarray(out), np.asarray(ref),
                               rtol=5e-2, atol=2e-2)
    print("KERNEL_OK")
</pallas_src>

<mosaic_0001>
module attributes {stable_mosaic.version = 11 : i64} {
  func.func @_route_func_kernel(%arg0: i32, %arg1: memref<8x1024xbf16, #tpu.memory_space<vmem>>, %arg2: memref<1024x144xbf16, #tpu.memory_space<vmem>>, %arg3: memref<144x16xf32, #tpu.memory_space<vmem>>, %arg4: memref<16x128xf32, #tpu.memory_space<vmem>>, %arg5: memref<8x128xf32, #tpu.memory_space<vmem>>) attributes {dimension_semantics = [#tpu.dimension_semantics<parallel>], iteration_bounds = array<i64: 1>, scalar_prefetch = 0 : i64, scratch_operands = 0 : i64, tpu.core_type = #tpu.core_type<tc>, window_params = [{transform_indices = @transform_0, window_bounds = array<i64: 8, 1024>}, {pipeline_mode = #tpu.pipeline_mode<synchronous>, transform_indices = @transform_1, window_bounds = array<i64: 1024, 144>}, {pipeline_mode = #tpu.pipeline_mode<synchronous>, transform_indices = @transform_2, window_bounds = array<i64: 144, 16>}, {pipeline_mode = #tpu.pipeline_mode<synchronous>, transform_indices = @transform_3, window_bounds = array<i64: 16, 128>}, {transform_indices = @transform_4, window_bounds = array<i64: 8, 128>}]} {
    %c0 = arith.constant 0 : index
    %c0_0 = arith.constant 0 : index
    %0 = vector.load %arg1[%c0, %c0_0] : memref<8x1024xbf16, #tpu.memory_space<vmem>>, vector<8x1024xbf16>
    %c0_1 = arith.constant 0 : index
    %c0_2 = arith.constant 0 : index
    %1 = vector.load %arg2[%c0_1, %c0_2] : memref<1024x144xbf16, #tpu.memory_space<vmem>>, vector<1024x144xbf16>
    %cst = arith.constant dense<0.000000e+00> : vector<8x144xf32>
    %2 = tpu.matmul %0, %1, %cst {dimension_numbers = #tpu.dot_dimension_numbers<[1], [0], [0], [1], [0, 0, 1, 1], [], []>} : vector<8x1024xbf16>, vector<1024x144xbf16>, vector<8x144xf32> -> vector<8x144xf32>
    %cst_3 = arith.constant 0.000000e+00 : f32
    %3 = vector.broadcast %cst_3 : f32 to vector<8x144xf32>
    %4 = arith.maximumf %2, %3 : vector<8x144xf32>
    %c0_4 = arith.constant 0 : index
    %c0_5 = arith.constant 0 : index
    %5 = vector.load %arg3[%c0_4, %c0_5] : memref<144x16xf32, #tpu.memory_space<vmem>>, vector<144x16xf32>
    %cst_6 = arith.constant dense<0.000000e+00> : vector<8x16xf32>
    %6 = tpu.matmul %4, %5, %cst_6 {dimension_numbers = #tpu.dot_dimension_numbers<[1], [0], [0], [1], [0, 0, 1, 1], [], []>} : vector<8x144xf32>, vector<144x16xf32>, vector<8x16xf32> -> vector<8x16xf32>
    %cst_7 = arith.constant 0.000000e+00 : f32
    %7 = vector.broadcast %cst_7 : f32 to vector<8x16xf32>
    %8 = arith.maximumf %6, %7 : vector<8x16xf32>
    %c0_8 = arith.constant 0 : index
    %c0_9 = arith.constant 0 : index
    %9 = vector.load %arg4[%c0_8, %c0_9] : memref<16x128xf32, #tpu.memory_space<vmem>>, vector<16x128xf32>
    %cst_10 = arith.constant dense<0.000000e+00> : vector<8x128xf32>
    %10 = tpu.matmul %8, %9, %cst_10 {dimension_numbers = #tpu.dot_dimension_numbers<[1], [0], [0], [1], [0, 0, 1, 1], [], []>} : vector<8x16xf32>, vector<16x128xf32>, vector<8x128xf32> -> vector<8x128xf32>
    %11 = arith.negf %10 : vector<8x128xf32>
    %12 = math.exp %11 : vector<8x128xf32>
    %cst_11 = arith.constant 1.000000e+00 : f32
    %13 = vector.broadcast %cst_11 : f32 to vector<8x128xf32>
    %14 = arith.addf %13, %12 : vector<8x128xf32>
    %15 = arith.divf %13, %14 : vector<8x128xf32>
    %c0_12 = arith.constant 0 : index
    %c0_13 = arith.constant 0 : index
    %16 = vector.load %arg5[%c0_12, %c0_13] : memref<8x128xf32, #tpu.memory_space<vmem>>, vector<8x128xf32>
    tpu.vector_store %arg5[%c0_12, %c0_13], %15 {strides = array<i32>} : memref<8x128xf32, #tpu.memory_space<vmem>>, vector<8x128xf32>,
    return
  }
  func.func @transform_0(%arg0: i32) -> (i32, i32) {
    %c0_i32 = arith.constant 0 : i32
    %c0_i32_0 = arith.constant 0 : i32
    return %arg0, %c0_i32 : i32, i32
  }
  func.func @transform_1(%arg0: i32) -> (i32, i32) {
    %c0_i32 = arith.constant 0 : i32
    %c0_i32_0 = arith.constant 0 : i32
    %c0_i32_1 = arith.constant 0 : i32
    return %c0_i32, %c0_i32_0 : i32, i32
  }
  func.func @transform_2(%arg0: i32) -> (i32, i32) {
    %c0_i32 = arith.constant 0 : i32
    %c0_i32_0 = arith.constant 0 : i32
    %c0_i32_1 = arith.constant 0 : i32
    return %c0_i32, %c0_i32_0 : i32, i32
  }
  func.func @transform_3(%arg0: i32) -> (i32, i32) {
    %c0_i32 = arith.constant 0 : i32
    %c0_i32_0 = arith.constant 0 : i32
    %c0_i32_1 = arith.constant 0 : i32
    return %c0_i32, %c0_i32_0 : i32, i32
  }
  func.func @transform_4(%arg0: i32) -> (i32, i32) {
    %c0_i32 = arith.constant 0 : i32
    %c0_i32_0 = arith.constant 0 : i32
    return %arg0, %c0_i32 : i32, i32
  }
}

</mosaic_0001>

<bundles_post_ra>
// kernel: tpu_custom_call.1
= control target key start
LH: loop header
LB: loop body
LE: loop exit
PB: predicated region body
PF: predicated region fallthrough
CT: control target
= control target key end

     0   :  { %9 = vsyncpa [#allocation3], 0  ;;  %vm1045_vm0 = vcmask 130048   ;;  %s2732_s0 = inlined_call_operand.vmem [shape: bf16[2,1024], index: 0, kind: input, shape index: {}]   ;;  %s2733_s1 = inlined_call_operand.vmem [shape: bf16[1024,144], index: 1, kind: input, shape index: {}]   ;;  %s2734_s2 = inlined_call_operand.vmem [shape: f32[144,16], index: 2, kind: input, shape index: {}]   ;;  %s2735_s3 = inlined_call_operand.vmem [shape: f32[16,128], index: 3, kind: input, shape index: {}]   ;;  %s2736_s4 = inlined_call_operand.hbm [shape: f32[2,128], index: 4, kind: output, shape index: {}]  }
   0x1   :  { %v1211_v0 = vld [vmem:[%s2733_s1 + $0x70] sm:$0xf]  ;;  %v1683_v1 = vld [vmem:[%s2733_s1 + $0x74] sm:$0xf0]  ;;  %v1203_v12 = vld [vmem:[%s2733_s1 + $0x60] sm:$0xf] }
   0x2   :  { %v1212_v2 = vor.u32 %v1683_v1, %v1211_v0  ;;  %v1275_v3 = vld [vmem:[%s2733_s1 + $0xf0] sm:$0xf]  ;;  %v1699_v4 = vld [vmem:[%s2733_s1 + $0xf4] sm:$0xf0]  ;;  %v1681_v13 = vld [vmem:[%s2733_s1 + $0x64] sm:$0xf0] }
   0x3   :  { %v1339_v5 = vld [vmem:[%s2733_s1 + $0x170] sm:$0xf]  ;;  %v1276_v6 = vor.u32 %v1699_v4, %v1275_v3  ;;  %v1715_v7 = vld [vmem:[%s2733_s1 + $0x174] sm:$0xf0]  ;;  %v1267_v14 = vld [vmem:[%s2733_s1 + $0xe0] sm:$0xf]  ;;  %v1204_v15 = vor.u32 %v1681_v13, %v1203_v12 }
   0x4   :  { %v1403_v8 = vld [vmem:[%s2733_s1 + $0x1f0] sm:$0xf]  ;;  %v1731_v9 = vld [vmem:[%s2733_s1 + $0x1f4] sm:$0xf0]  ;;  %817 = vmatpush.bf16.msra.mxu0 %v1212_v2  ;;  %v1340_v10 = vor.u32 %v1715_v7, %v1339_v5  ;;  %v1697_v16 = vld [vmem:[%s2733_s1 + $0xe4] sm:$0xf0] }
   0x5   :  { %v1404_v11 = vor.u32 %v1731_v9, %v1403_v8  ;;  %830 = vmatpush.bf16.msra.mxu1 %v1276_v6  ;;  %v1331_v17 = vld [vmem:[%s2733_s1 + $0x160] sm:$0xf]  ;;  %v1713_v18 = vld [vmem:[%s2733_s1 + $0x164] sm:$0xf0]  ;;  %v1268_v19 = vor.u32 %v1697_v16, %v1267_v14  ;;  %v1195_v23 = vld [vmem:[%s2733_s1 + $0x50] sm:$0xf] }
   0x6   :  { %843 = vmatpush.bf16.msra.mxu2 %v1340_v10  ;;  %v1332_v20 = vor.u32 %v1713_v18, %v1331_v17  ;;  %v1395_v21 = vld [vmem:[%s2733_s1 + $0x1e0] sm:$0xf]  ;;  %v1729_v22 = vld [vmem:[%s2733_s1 + $0x1e4] sm:$0xf0]  ;;  %v1679_v25 = vld [vmem:[%s2733_s1 + $0x54] sm:$0xf0] }
   0x7   :  { %856 = vmatpush.bf16.msra.mxu3 %v1404_v11  ;;  %v1396_v24 = vor.u32 %v1729_v22, %v1395_v21  ;;  %v1259_v26 = vld [vmem:[%s2733_s1 + $0xd0] sm:$0xf]  ;;  %v1695_v27 = vld [vmem:[%s2733_s1 + $0xd4] sm:$0xf0]  ;;  %v1196_v28 = vor.u32 %v1679_v25, %v1195_v23  ;;  %v1187_v34 = vld [vmem:[%s2733_s1 + $0x40] sm:$0xf] }
   0x8   :  { %818 = vmatpush.bf16.msra.mxu0 %v1204_v15  ;;  %v1323_v29 = vld [vmem:[%s2733_s1 + $0x150] sm:$0xf]  ;;  %v1711_v30 = vld [vmem:[%s2733_s1 + $0x154] sm:$0xf0]  ;;  %v1260_v32 = vor.u32 %v1695_v27, %v1259_v26  ;;  %v1677_v35 = vld [vmem:[%s2733_s1 + $0x44] sm:$0xf0] }
   0x9   :  { %v1387_v31 = vld [vmem:[%s2733_s1 + $0x1d0] sm:$0xf]  ;;  %831 = vmatpush.bf16.msra.mxu1 %v1268_v19  ;;  %v1727_v33 = vld [vmem:[%s2733_s1 + $0x1d4] sm:$0xf0]  ;;  %v1324_v36 = vor.u32 %v1711_v30, %v1323_v29  ;;  %v1251_v38 = vld [vmem:[%s2733_s1 + $0xc0] sm:$0xf]  ;;  %v1188_v44 = vor.u32 %v1677_v35, %v1187_v34 }
   0xa   :  { %844 = vmatpush.bf16.msra.mxu2 %v1332_v20  ;;  %v1388_v37 = vor.u32 %v1727_v33, %v1387_v31  ;;  %v1693_v39 = vld [vmem:[%s2733_s1 + $0xc4] sm:$0xf0]  ;;  %v1315_v40 = vld [vmem:[%s2733_s1 + $0x140] sm:$0xf]  ;;  %v1179_v46 = vld [vmem:[%s2733_s1 + $0x30] sm:$0xf] }
   0xb   :  { %857 = vmatpush.bf16.msra.mxu3 %v1396_v24  ;;  %v1709_v41 = vld [vmem:[%s2733_s1 + $0x144] sm:$0xf0]  ;;  %v1379_v42 = vld [vmem:[%s2733_s1 + $0x1c0] sm:$0xf]  ;;  %v1252_v45 = vor.u32 %v1693_v39, %v1251_v38  ;;  %v1675_v47 = vld [vmem:[%s2733_s1 + $0x34] sm:$0xf0] }
   0xc   :  { %v1725_v43 = vld [vmem:[%s2733_s1 + $0x1c4] sm:$0xf0]  ;;  %819 = vmatpush.bf16.msra.mxu0 %v1196_v28  ;;  %v1316_v48 = vor.u32 %v1709_v41, %v1315_v40  ;;  %v1243_v50 = vld [vmem:[%s2733_s1 + $0xb0] sm:$0xf]  ;;  %v1691_v51 = vld [vmem:[%s2733_s1 + $0xb4] sm:$0xf0]  ;;  %v1180_v56 = vor.u32 %v1675_v47, %v1179_v46 }
   0xd   :  { %832 = vmatpush.bf16.msra.mxu1 %v1260_v32  ;;  %v1380_v49 = vor.u32 %v1725_v43, %v1379_v42  ;;  %v1307_v52 = vld [vmem:[%s2733_s1 + $0x130] sm:$0xf]  ;;  %v1707_v53 = vld [vmem:[%s2733_s1 + $0x134] sm:$0xf0]  ;;  %v1244_v57 = vor.u32 %v1691_v51, %v1243_v50  ;;  %v1171_v58 = vld [vmem:[%s2733_s1 + $0x20] sm:$0xf] }
   0xe   :  { %845 = vmatpush.bf16.msra.mxu2 %v1324_v36  ;;  %v1371_v54 = vld [vmem:[%s2733_s1 + $0x1b0] sm:$0xf]  ;;  %v1723_v55 = vld [vmem:[%s2733_s1 + $0x1b4] sm:$0xf0]  ;;  %v1673_v59 = vld [vmem:[%s2733_s1 + $0x24] sm:$0xf0]  ;;  %v1308_v60 = vor.u32 %v1707_v53, %v1307_v52 }
   0xf   :  { %858 = vmatpush.bf16.msra.mxu3 %v1388_v37  ;;  %v1372_v61 = vor.u32 %v1723_v55, %v1371_v54  ;;  %v1235_v62 = vld [vmem:[%s2733_s1 + $0xa0] sm:$0xf]  ;;  %v1689_v63 = vld [vmem:[%s2733_s1 + $0xa4] sm:$0xf0]  ;;  %v1172_v4 = vor.u32 %v1673_v59, %v1171_v58  ;;  %v1163_v6 = vld [vmem:[%s2733_s1 + $0x10] sm:$0xf] }
  0x10   :  { %820 = vmatpush.bf16.msra.mxu0 %v1188_v44  ;;  %v1299_v0 = vld [vmem:[%s2733_s1 + $0x120] sm:$0xf]  ;;  %v1705_v1 = vld [vmem:[%s2733_s1 + $0x124] sm:$0xf0]  ;;  %v1236_v5 = vor.u32 %v1689_v63, %v1235_v62  ;;  %v1671_v7 = vld [vmem:[%s2733_s1 + $0x14] sm:$0xf0] }
  0x11   :  { %833 = vmatpush.bf16.msra.mxu1 %v1252_v45  ;;  %v1363_v2 = vld [vmem:[%s2733_s1 + $0x1a0] sm:$0xf]  ;;  %v1721_v3 = vld [vmem:[%s2733_s1 + $0x1a4] sm:$0xf0]  ;;  %v1300_v8 = vor.u32 %v1705_v1, %v1299_v0  ;;  %v1227_v10 = vld [vmem:[%s2733_s1 + $0x90] sm:$0xf]  ;;  %v1164_v16 = vor.u32 %v1671_v7, %v1163_v6 }
  0x12   :  { %846 = vmatpush.bf16.msra.mxu2 %v1316_v48  ;;  %v1364_v9 = vor.u32 %v1721_v3, %v1363_v2  ;;  %v1687_v11 = vld [vmem:[%s2733_s1 + $0x94] sm:$0xf0]  ;;  %v1291_v12 = vld [vmem:[%s2733_s1 + $0x110] sm:$0xf]  ;;  %v1155_v17 = vld [vmem:[%s2733_s1] sm:$0xf] }
  0x13   :  { %859 = vmatpush.bf16.msra.mxu3 %v1380_v49  ;;  %v1703_v13 = vld [vmem:[%s2733_s1 + $0x114] sm:$0xf0]  ;;  %v1355_v14 = vld [vmem:[%s2733_s1 + $0x190] sm:$0xf]  ;;  %v1669_v18 = vld [vmem:[%s2733_s1 + $0x4] sm:$0xf0]  ;;  %v1228_v19 = vor.u32 %v1687_v11, %v1227_v10 }
  0x14   :  { %821 = vmatpush.bf16.msra.mxu0 %v1180_v56  ;;  %v1719_v15 = vld [vmem:[%s2733_s1 + $0x194] sm:$0xf0]  ;;  %v1219_v20 = vld [vmem:[%s2733_s1 + $0x80] sm:$0xf]  ;;  %v1685_v21 = vld [vmem:[%s2733_s1 + $0x84] sm:$0xf0]  ;;  %v1292_v23 = vor.u32 %v1703_v13, %v1291_v12  ;;  %v1156_v31 = vor.u32 %v1669_v18, %v1155_v17 }
  0x15   :  { %834 = vmatpush.bf16.msra.mxu1 %v1244_v57  ;;  %v1283_v22 = vld [vmem:[%s2733_s1 + $0x100] sm:$0xf]  ;;  %v1356_v24 = vor.u32 %v1719_v15, %v1355_v14  ;;  %v1701_v25 = vld [vmem:[%s2733_s1 + $0x104] sm:$0xf0]  ;;  %v1467_v26 = vld [vmem:[%s2733_s1 + $0x270] sm:$0xf]  ;;  %v1220_v35 = vor.u32 %v1685_v21, %v1219_v20 }
  0x16   :  { %847 = vmatpush.bf16.msra.mxu2 %v1308_v60  ;;  %v1747_v27 = vld [vmem:[%s2733_s1 + $0x274] sm:$0xf0]  ;;  %v1347_v28 = vld [vmem:[%s2733_s1 + $0x180] sm:$0xf]  ;;  %v1717_v29 = vld [vmem:[%s2733_s1 + $0x184] sm:$0xf0]  ;;  %v1284_v39 = vor.u32 %v1701_v25, %v1283_v22 }
  0x17   :  { %860 = vmatpush.bf16.msra.mxu3 %v1372_v61  ;;  %v1531_v30 = vld [vmem:[%s2733_s1 + $0x2f0] sm:$0xf]  ;;  %v1763_v32 = vld [vmem:[%s2733_s1 + $0x2f4] sm:$0xf0]  ;;  %v1468_v36 = vor.u32 %v1747_v27, %v1467_v26  ;;  %v1348_v40 = vor.u32 %v1717_v29, %v1347_v28  ;;  %v1459_v41 = vld [vmem:[%s2733_s1 + $0x260] sm:$0xf] }
  0x18   :  { %822 = vmatpush.bf16.msra.mxu0 %v1172_v4  ;;  %v1595_v33 = vld [vmem:[%s2733_s1 + $0x370] sm:$0xf]  ;;  %v1779_v34 = vld [vmem:[%s2733_s1 + $0x374] sm:$0xf0]  ;;  %v1745_v42 = vld [vmem:[%s2733_s1 + $0x264] sm:$0xf0]  ;;  %v1532_v43 = vor.u32 %v1763_v32, %v1531_v30 }
  0x19   :  { %835 = vmatpush.bf16.msra.mxu1 %v1236_v5  ;;  %v1659_v37 = vld [vmem:[%s2733_s1 + $0x3f0] sm:$0xf]  ;;  %v1795_v38 = vld [vmem:[%s2733_s1 + $0x3f4] sm:$0xf0]  ;;  %v1596_v44 = vor.u32 %v1779_v34, %v1595_v33  ;;  %v1523_v45 = vld [vmem:[%s2733_s1 + $0x2e0] sm:$0xf]  ;;  %v1460_v50 = vor.u32 %v1745_v42, %v1459_v41 }
  0x1a   :  { %848 = vmatpush.bf16.msra.mxu2 %v1300_v8  ;;  %v1660_v46 = vor.u32 %v1795_v38, %v1659_v37  ;;  %v1761_v47 = vld [vmem:[%s2733_s1 + $0x2e4] sm:$0xf0]  ;;  %v1587_v48 = vld [vmem:[%s2733_s1 + $0x360] sm:$0xf]  ;;  %v1451_v53 = vld [vmem:[%s2733_s1 + $0x250] sm:$0xf] }
  0x1b   :  { %861 = vmatpush.bf16.msra.mxu3 %v1364_v9  ;;  %v1777_v49 = vld [vmem:[%s2733_s1 + $0x364] sm:$0xf0]  ;;  %v1651_v51 = vld [vmem:[%s2733_s1 + $0x3e0] sm:$0xf]  ;;  %v1743_v54 = vld [vmem:[%s2733_s1 + $0x254] sm:$0xf0]  ;;  %v1524_v57 = vor.u32 %v1761_v47, %v1523_v45 }
  0x1c   :  { %823 = vmatpush.bf16.msra.mxu0 %v1164_v16  ;;  %v1793_v52 = vld [vmem:[%s2733_s1 + $0x3e4] sm:$0xf0]  ;;  %v1515_v55 = vld [vmem:[%s2733_s1 + $0x2d0] sm:$0xf]  ;;  %v1759_v56 = vld [vmem:[%s2733_s1 + $0x2d4] sm:$0xf0]  ;;  %v1588_v58 = vor.u32 %v1777_v49, %v1587_v48  ;;  %v1452_v2 = vor.u32 %v1743_v54, %v1451_v53 }
  0x1d   :  { %836 = vmatpush.bf16.msra.mxu1 %v1228_v19  ;;  %v1579_v59 = vld [vmem:[%s2733_s1 + $0x350] sm:$0xf]  ;;  %v1775_v60 = vld [vmem:[%s2733_s1 + $0x354] sm:$0xf0]  ;;  %v1652_v62 = vor.u32 %v1793_v52, %v1651_v51  ;;  %v18_v63 = vld [vmem:[%s2732_s0] sm:$0xff]  ;;  %v1516_v7 = vor.u32 %v1759_v56, %v1515_v55 }
  0x1e   :  { %849 = vmatpush.bf16.msra.mxu2 %v1292_v23  ;;  %v1643_v61 = vld [vmem:[%s2733_s1 + $0x3d0] sm:$0xf]  ;;  %v19_v0 = vld [vmem:[%s2732_s0 + $0x8] sm:$0xff]  ;;  %v1791_v3 = vld [vmem:[%s2733_s1 + $0x3d4] sm:$0xf0]  ;;  %v1580_v8 = vor.u32 %v1775_v60, %v1579_v59 }
  0x1f   :  { %862 = vmatpush.bf16.msra.mxu3 %v1356_v24  ;;  %v20_v1 = vld [vmem:[%s2732_s0 + $0x10] sm:$0xff]  ;;  %v21_v4 = vld [vmem:[%s2732_s0 + $0x18] sm:$0xff]  ;;  %151 = vst [vmem:[#allocation1] ss:$9 sm:$0xff] %v18_v63  ;;  %v1443_v5 = vld [vmem:[%s2733_s1 + $0x240] sm:$0xf]  ;;  %v1644_v11 = vor.u32 %v1791_v3, %v1643_v61 }
  0x20   :  { %824 = vmatpush.bf16.msra.mxu0 %v1156_v31  ;;  %v1741_v6 = vld [vmem:[%s2733_s1 + $0x244] sm:$0xf0]  ;;  %154 = vst [vmem:[#allocation1 + $0x1] ss:$9 sm:$0xff] %v19_v0  ;;  %v1507_v9 = vld [vmem:[%s2733_s1 + $0x2c0] sm:$0xf] }
  0x21   :  { %837 = vmatpush.bf16.msra.mxu1 %v1220_v35  ;;  %v1757_v10 = vld [vmem:[%s2733_s1 + $0x2c4] sm:$0xf0]  ;;  %157 = vst [vmem:[#allocation1 + $0x2] ss:$9 sm:$0xff] %v20_v1  ;;  %v1571_v12 = vld [vmem:[%s2733_s1 + $0x340] sm:$0xf]  ;;  %v1444_v14 = vor.u32 %v1741_v6, %v1443_v5 }
  0x22   :  { %850 = vmatpush.bf16.msra.mxu2 %v1284_v39  ;;  %v1773_v13 = vld [vmem:[%s2733_s1 + $0x344] sm:$0xf0]  ;;  %160 = vst [vmem:[#allocation1 + $0x3] ss:$9 sm:$0xff] %v21_v4  ;;  %v1635_v15 = vld [vmem:[%s2733_s1 + $0x3c0] sm:$0xf]  ;;  %v1508_v19 = vor.u32 %v1757_v10, %v1507_v9 }
  0x23   :  { %863 = vmatpush.bf16.msra.mxu3 %v1348_v40  ;;  %v1789_v16 = vld [vmem:[%s2733_s1 + $0x3c4] sm:$0xf0]  ;;  %v1435_v17 = vld [vmem:[%s2733_s1 + $0x230] sm:$0xf]  ;;  %v1739_v18 = vld [vmem:[%s2733_s1 + $0x234] sm:$0xf0]  ;;  %v1572_v20 = vor.u32 %v1773_v13, %v1571_v12 }
  0x24   :  { %869 = vmatpush.bf16.msrb.mxu0 %v1468_v36  ;;  %v1499_v21 = vld [vmem:[%s2733_s1 + $0x2b0] sm:$0xf]  ;;  %v1636_v22 = vor.u32 %v1789_v16, %v1635_v15  ;;  %v1755_v23 = vld [vmem:[%s2733_s1 + $0x2b4] sm:$0xf0]  ;;  %v1436_v26 = vor.u32 %v1739_v18, %v1435_v17  ;;  %v1427_v29 = vld [vmem:[%s2733_s1 + $0x220] sm:$0xf] }
  0x25   :  { %882 = vmatpush.bf16.msrb.mxu1 %v1532_v43  ;;  %v1563_v24 = vld [vmem:[%s2733_s1 + $0x330] sm:$0xf]  ;;  %v1771_v25 = vld [vmem:[%s2733_s1 + $0x334] sm:$0xf0]  ;;  %v1737_v30 = vld [vmem:[%s2733_s1 + $0x224] sm:$0xf0]  ;;  %v1500_v33 = vor.u32 %v1755_v23, %v1499_v21 }
  0x26   :  { %895 = vmatpush.bf16.msrb.mxu2 %v1596_v44  ;;  %v1627_v27 = vld [vmem:[%s2733_s1 + $0x3b0] sm:$0xf]  ;;  %v1787_v28 = vld [vmem:[%s2733_s1 + $0x3b4] sm:$0xf0]  ;;  %v1491_v31 = vld [vmem:[%s2733_s1 + $0x2a0] sm:$0xf]  ;;  %v1564_v34 = vor.u32 %v1771_v25, %v1563_v24  ;;  %v1428_v42 = vor.u32 %v1737_v30, %v1427_v29 }
  0x27   :  { %908 = vmatpush.bf16.msrb.mxu3 %v1660_v46  ;;  %v1753_v32 = vld [vmem:[%s2733_s1 + $0x2a4] sm:$0xf0]  ;;  %v1628_v38 = vor.u32 %v1787_v28, %v1627_v27  ;;  %v1555_v39 = vld [vmem:[%s2733_s1 + $0x320] sm:$0xf]  ;;  %v1419_v45 = vld [vmem:[%s2733_s1 + $0x210] sm:$0xf] }
  0x28   :  { %870 = vmatpush.bf16.msrb.mxu0 %v1460_v50  ;;  %v1769_v40 = vld [vmem:[%s2733_s1 + $0x324] sm:$0xf0]  ;;  %v1619_v43 = vld [vmem:[%s2733_s1 + $0x3a0] sm:$0xf]  ;;  %v1735_v46 = vld [vmem:[%s2733_s1 + $0x214] sm:$0xf0]  ;;  %v1492_v47 = vor.u32 %v1753_v32, %v1491_v31 }
  0x29   :  { %883 = vmatpush.bf16.msrb.mxu1 %v1524_v57  ;;  %v2193_v35 = vld [vmem:[#allocation1 + $0x12] sm:$0xff]  ;;  %v2195_v36 = vld [vmem:[#allocation1] sm:$0xff]  ;;  %v2206_v41 = vld [vmem:[#allocation1 + $0x9] sm:$0xff]  ;;  %v1556_v48 = vor.u32 %v1769_v40, %v1555_v39  ;;  %v1420_v54 = vor.u32 %v1735_v46, %v1419_v45 }
  0x2a   :  { %896 = vmatpush.bf16.msrb.mxu2 %v1588_v58  ;;  %v2197_v37 = vld [vmem:[#allocation1 + $0x1b] sm:$0xff]  ;;  %v1785_v44 = vld [vmem:[%s2733_s1 + $0x3a4] sm:$0xf0]  ;;  %825 = vmatmul.bf16.vlgmr.msra.gmra.mxu0 %v2195_v36  ;;  %v1483_v49 = vld [vmem:[%s2733_s1 + $0x290] sm:$0xf] }
  0x2b   :  { %909 = vmatpush.bf16.msrb.mxu3 %v1652_v62  ;;  %851 = vmatmul.bf16.vlgmr.msra.gmra.mxu2 %v2193_v35  ;;  %v1620_v50 = vor.u32 %v1785_v44, %v1619_v43  ;;  %v1751_v51 = vld [vmem:[%s2733_s1 + $0x294] sm:$0xf0]  ;;  %v1547_v52 = vld [vmem:[%s2733_s1 + $0x310] sm:$0xf]  ;;  %v1411_v57 = vld [vmem:[%s2733_s1 + $0x200] sm:$0xf] }
  0x2c   :  { %871 = vmatpush.bf16.msrb.mxu0 %v1452_v2  ;;  %864 = vmatmul.bf16.vlgmr.msra.gmra.mxu3 %v2197_v37  ;;  %v1767_v53 = vld [vmem:[%s2733_s1 + $0x314] sm:$0xf0]  ;;  %v1611_v55 = vld [vmem:[%s2733_s1 + $0x390] sm:$0xf]  ;;  %v1733_v58 = vld [vmem:[%s2733_s1 + $0x204] sm:$0xf0]  ;;  %v1484_v61 = vor.u32 %v1751_v51, %v1483_v49 }
  0x2d   :  { %884 = vmatpush.bf16.msrb.mxu1 %v1516_v7  ;;  %v1783_v56 = vld [vmem:[%s2733_s1 + $0x394] sm:$0xf0]  ;;  %v1475_v59 = vld [vmem:[%s2733_s1 + $0x280] sm:$0xf]  ;;  %v1749_v60 = vld [vmem:[%s2733_s1 + $0x284] sm:$0xf0]  ;;  %v1548_v62 = vor.u32 %v1767_v53, %v1547_v52  ;;  %v1412_v6 = vor.u32 %v1733_v58, %v1411_v57 }
  0x2e   :  { %897 = vmatpush.bf16.msrb.mxu2 %v1580_v8  ;;  %838 = vmatmul.bf16.vlgmr.msra.gmra.mxu1 %v2206_v41  ;;  %v1539_v63 = vld [vmem:[%s2733_s1 + $0x300] sm:$0xf]  ;;  %v1682_v0 = vld [vmem:[%s2733_s1 + $0x74] sm:$0xf]  ;;  %v1213_v1 = vld [vmem:[%s2733_s1 + $0x78] sm:$0xf0]  ;;  %v1612_v2 = vor.u32 %v1783_v56, %v1611_v55 }
  0x2f   :  { %910 = vmatpush.bf16.msrb.mxu3 %v1644_v11  ;;  %v1765_v3 = vld [vmem:[%s2733_s1 + $0x304] sm:$0xf0]  ;;  %v1603_v4 = vld [vmem:[%s2733_s1 + $0x380] sm:$0xf]  ;;  %v1698_v7 = vld [vmem:[%s2733_s1 + $0xf4] sm:$0xf]  ;;  %v1216_v10 = vor.u32 %v1682_v0, %v1213_v1 }
  0x30   :  { %872 = vmatpush.bf16.msrb.mxu0 %v1444_v14  ;;  %v1781_v5 = vld [vmem:[%s2733_s1 + $0x384] sm:$0xf0]  ;;  %v1277_v8 = vld [vmem:[%s2733_s1 + $0xf8] sm:$0xf0]  ;;  %v1714_v9 = vld [vmem:[%s2733_s1 + $0x174] sm:$0xf]  ;;  %v1476_v14 = vor.u32 %v1749_v60, %v1475_v59  ;;  %v1540_v15 = vor.u32 %v1765_v3, %v1539_v63 }
  0x31   :  { %885 = vmatpush.bf16.msrb.mxu1 %v1508_v19  ;;  %v1341_v11 = vld [vmem:[%s2733_s1 + $0x178] sm:$0xf0]  ;;  %v1730_v12 = vld [vmem:[%s2733_s1 + $0x1f4] sm:$0xf]  ;;  %v1680_v16 = vld [vmem:[%s2733_s1 + $0x64] sm:$0xf]  ;;  %v1604_v18 = vor.u32 %v1781_v5, %v1603_v4  ;;  %v1280_v19 = vor.u32 %v1698_v7, %v1277_v8 }
  0x32   :  { %898 = vmatpush.bf16.msrb.mxu2 %v1572_v20  ;;  %v1405_v13 = vld [vmem:[%s2733_s1 + $0x1f8] sm:$0xf0]  ;;  %v1205_v17 = vld [vmem:[%s2733_s1 + $0x68] sm:$0xf0]  ;;  %v1344_v20 = vor.u32 %v1714_v9, %v1341_v11  ;;  %v1712_v24 = vld [vmem:[%s2733_s1 + $0x164] sm:$0xf] }
  0x33   :  { %911 = vmatpush.bf16.msrb.mxu3 %v1636_v22  ;;  %v1408_v21 = vor.u32 %v1730_v12, %v1405_v13  ;;  %v1696_v22 = vld [vmem:[%s2733_s1 + $0xe4] sm:$0xf]  ;;  %v1269_v23 = vld [vmem:[%s2733_s1 + $0xe8] sm:$0xf0]  ;;  %v1208_v25 = vor.u32 %v1680_v16, %v1205_v17  ;;  %v2313_v29 = vld [vmem:[#allocation1 + $0x36] sm:$0xff] }
  0x34   :  { %873 = vmatpush.bf16.msrb.mxu0 %v1436_v26  ;;  %v1333_v26 = vld [vmem:[%s2733_s1 + $0x168] sm:$0xf0]  ;;  %v1728_v27 = vld [vmem:[%s2733_s1 + $0x1e4] sm:$0xf]  ;;  %v1678_v30 = vld [vmem:[%s2733_s1 + $0x54] sm:$0xf]  ;;  %v1272_v32 = vor.u32 %v1696_v22, %v1269_v23 }
  0x35   :  { %886 = vmatpush.bf16.msrb.mxu1 %v1500_v33  ;;  %v1397_v28 = vld [vmem:[%s2733_s1 + $0x1e8] sm:$0xf0]  ;;  %v1197_v31 = vld [vmem:[%s2733_s1 + $0x58] sm:$0xf0]  ;;  %v2321_v33 = vld [vmem:[#allocation1 + $0x24] sm:$0xff] }
  0x36   :  { %899 = vmatpush.bf16.msrb.mxu2 %v1564_v34  ;;  %v2323_v34 = vld [vmem:[#allocation1 + $0x3f] sm:$0xff]  ;;  %v1400_v39 = vor.u32 %v1728_v27, %v1397_v28  ;;  %v1694_v40 = vld [vmem:[%s2733_s1 + $0xd4] sm:$0xf]  ;;  %v1200_v44 = vor.u32 %v1678_v30, %v1197_v31  ;;  %v1253_v55 = vld [vmem:[%s2733_s1 + $0xc8] sm:$0xf0] }
  0x37   :  { %912 = vmatpush.bf16.msrb.mxu3 %v1628_v38  ;;  %v1336_v38 = vor.u32 %v1712_v24, %v1333_v26  ;;  %v1710_v43 = vld [vmem:[%s2733_s1 + $0x154] sm:$0xf]  ;;  %v1325_v45 = vld [vmem:[%s2733_s1 + $0x158] sm:$0xf0]  ;;  %v1676_v49 = vld [vmem:[%s2733_s1 + $0x44] sm:$0xf] }
  0x38   :  { %874 = vmatpush.bf16.msrb.mxu0 %v1428_v42  ;;  %v1261_v42 = vld [vmem:[%s2733_s1 + $0xd8] sm:$0xf0]  ;;  %v1726_v46 = vld [vmem:[%s2733_s1 + $0x1d4] sm:$0xf]  ;;  %v1328_v52 = vor.u32 %v1710_v43, %v1325_v45  ;;  %v1708_v56 = vld [vmem:[%s2733_s1 + $0x144] sm:$0xf] }
  0x39   :  { %887 = vmatpush.bf16.msrb.mxu1 %v1492_v47  ;;  %v1389_v47 = vld [vmem:[%s2733_s1 + $0x1d8] sm:$0xf0]  ;;  %v1264_v51 = vor.u32 %v1694_v40, %v1261_v42  ;;  %v1317_v58 = vld [vmem:[%s2733_s1 + $0x148] sm:$0xf0]  ;;  %v1724_v59 = vld [vmem:[%s2733_s1 + $0x1c4] sm:$0xf] }
  0x3a   :  { %900 = vmatpush.bf16.msrb.mxu2 %v1556_v48  ;;  %v2346_v48 = vld [vmem:[#allocation1 + $0x2d] sm:$0xff]  ;;  %v1392_v53 = vor.u32 %v1726_v46, %v1389_v47  ;;  %v1320_v0 = vor.u32 %v1708_v56, %v1317_v58  ;;  %v1245_v3 = vld [vmem:[%s2733_s1 + $0xb8] sm:$0xf0]  ;;  %v1672_v9 = vld [vmem:[%s2733_s1 + $0x24] sm:$0xf] }
  0x3b   :  { %913 = vmatpush.bf16.msrb.mxu3 %v1620_v50  ;;  %v1189_v50 = vld [vmem:[%s2733_s1 + $0x48] sm:$0xf0]  ;;  %v1706_v4 = vld [vmem:[%s2733_s1 + $0x134] sm:$0xf]  ;;  %v1373_v8 = vld [vmem:[%s2733_s1 + $0x1b8] sm:$0xf0] }
  0x3c   :  { %875 = vmatpush.bf16.msrb.mxu0 %v1420_v54  ;;  %v1692_v54 = vld [vmem:[%s2733_s1 + $0xc4] sm:$0xf]  ;;  %v1192_v57 = vor.u32 %v1676_v49, %v1189_v50  ;;  %v1381_v60 = vld [vmem:[%s2733_s1 + $0x1c8] sm:$0xf0]  ;;  %v1722_v7 = vld [vmem:[%s2733_s1 + $0x1b4] sm:$0xf] }
  0x3d   :  { %888 = vmatpush.bf16.msrb.mxu1 %v1484_v61  ;;  %v1674_v61 = vld [vmem:[%s2733_s1 + $0x34] sm:$0xf]  ;;  %v1256_v63 = vor.u32 %v1692_v54, %v1253_v55  ;;  %v1384_v1 = vor.u32 %v1724_v59, %v1381_v60  ;;  %v1376_v13 = vor.u32 %v1722_v7, %v1373_v8  ;;  %v1704_v16 = vld [vmem:[%s2733_s1 + $0x124] sm:$0xf]  ;;  %v1165_v22 = vld [vmem:[%s2733_s1 + $0x18] sm:$0xf0] }
  0x3e   :  { %901 = vmatpush.bf16.msrb.mxu2 %v1548_v62  ;;  %v1181_v62 = vld [vmem:[%s2733_s1 + $0x38] sm:$0xf0]  ;;  %v1686_v26 = vld [vmem:[%s2733_s1 + $0x94] sm:$0xf]  ;;  %v1157_v40 = vld [vmem:[%s2733_s1 + $0x8] sm:$0xf0] }
  0x3f   :  { %914 = vmatpush.bf16.msrb.mxu3 %v1612_v2  ;;  %v1690_v2 = vld [vmem:[%s2733_s1 + $0xb4] sm:$0xf]  ;;  %v1184_v5 = vor.u32 %v1674_v61, %v1181_v62  ;;  %v1229_v27 = vld [vmem:[%s2733_s1 + $0x98] sm:$0xf0]  ;;  %v1684_v42 = vld [vmem:[%s2733_s1 + $0x84] sm:$0xf] }
  0x40   :  { %876 = vmatpush.bf16.msrb.mxu0 %v1412_v6  ;;  %v1309_v6 = vld [vmem:[%s2733_s1 + $0x138] sm:$0xf0]  ;;  %v1248_v11 = vor.u32 %v1690_v2, %v1245_v3  ;;  %v1702_v28 = vld [vmem:[%s2733_s1 + $0x114] sm:$0xf]  ;;  %v1232_v43 = vor.u32 %v1686_v26, %v1229_v27  ;;  %v1700_v50 = vld [vmem:[%s2733_s1 + $0x104] sm:$0xf] }
  0x41   :  { %889 = vmatpush.bf16.msrb.mxu1 %v1476_v14  ;;  %v1312_v12 = vor.u32 %v1706_v4, %v1309_v6  ;;  %v1688_v14 = vld [vmem:[%s2733_s1 + $0xa4] sm:$0xf]  ;;  %v1293_v31 = vld [vmem:[%s2733_s1 + $0x118] sm:$0xf0]  ;;  %v1746_v45 = vld [vmem:[%s2733_s1 + $0x274] sm:$0xf] }
  0x42   :  { %902 = vmatpush.bf16.msrb.mxu2 %v1540_v15  ;;  %v1237_v15 = vld [vmem:[%s2733_s1 + $0xa8] sm:$0xf0]  ;;  %v1469_v46 = vld [vmem:[%s2733_s1 + $0x278] sm:$0xf0]  ;;  %v1296_v47 = vor.u32 %v1702_v28, %v1293_v31  ;;  %v1762_v55 = vld [vmem:[%s2733_s1 + $0x2f4] sm:$0xf] }
  0x43   :  { %915 = vmatpush.bf16.msrb.mxu3 %v1604_v18  ;;  %877 = vmatmul.bf16.vlgmr.msrb.gmra.mxu0 %v2321_v33  ;;  %v1301_v18 = vld [vmem:[%s2733_s1 + $0x128] sm:$0xf0]  ;;  %v1240_v23 = vor.u32 %v1688_v14, %v1237_v15  ;;  %v1533_v56 = vld [vmem:[%s2733_s1 + $0x2f8] sm:$0xf0]  ;;  %v1778_v58 = vld [vmem:[%s2733_s1 + $0x374] sm:$0xf] }
  0x44   :  { %921 = vmatpush.bf16.msra.mxu0 %v1216_v10  ;;  %890 = vmatmul.bf16.vlgmr.msrb.gmra.mxu1 %v2346_v48  ;;  %v1173_v10 = vld [vmem:[%s2733_s1 + $0x28] sm:$0xf0]  ;;  %v1304_v24 = vor.u32 %v1704_v16, %v1301_v18  ;;  %v1597_v59 = vld [vmem:[%s2733_s1 + $0x378] sm:$0xf0]  ;;  %v1794_v60 = vld [vmem:[%s2733_s1 + $0x3f4] sm:$0xf]  ;;  %v1536_v3 = vor.u32 %v1762_v55, %v1533_v56 }
  0x45   :  { %934 = vmatpush.bf16.msra.mxu1 %v1280_v19  ;;  %903 = vmatmul.bf16.vlgmr.msrb.gmra.mxu2 %v2313_v29  ;;  %v1176_v17 = vor.u32 %v1672_v9, %v1173_v10  ;;  %v1720_v19 = vld [vmem:[%s2733_s1 + $0x1a4] sm:$0xf]  ;;  %v1349_v54 = vld [vmem:[%s2733_s1 + $0x188] sm:$0xf0]  ;;  %v1661_v62 = vld [vmem:[%s2733_s1 + $0x3f8] sm:$0xf0]  ;;  %v1600_v4 = vor.u32 %v1778_v58, %v1597_v59 }
  0x46   :  { %947 = vmatpush.bf16.msra.mxu2 %v1344_v20  ;;  %916 = vmatmul.bf16.vlgmr.msrb.gmra.mxu3 %v2323_v34  ;;  %v1365_v20 = vld [vmem:[%s2733_s1 + $0x1a8] sm:$0xf0]  ;;  %v1664_v7 = vor.u32 %v1794_v60, %v1661_v62  ;;  %v1776_v9 = vld [vmem:[%s2733_s1 + $0x364] sm:$0xf]  ;;  %v1453_v14 = vld [vmem:[%s2733_s1 + $0x258] sm:$0xf0] }
  0x47   :  { %960 = vmatpush.bf16.msra.mxu3 %v1408_v21  ;;  %v1670_v21 = vld [vmem:[%s2733_s1 + $0x14] sm:$0xf]  ;;  %v1525_v6 = vld [vmem:[%s2733_s1 + $0x2e8] sm:$0xf0]  ;;  %v1517_v18 = vld [vmem:[%s2733_s1 + $0x2d8] sm:$0xf0] }
  0x48   :  { %922 = vmatpush.bf16.msra.mxu0 %v1208_v25  ;;  %v1368_v25 = vor.u32 %v1720_v19, %v1365_v20  ;;  %v1168_v30 = vor.u32 %v1670_v21, %v1165_v22  ;;  %v1589_v10 = vld [vmem:[%s2733_s1 + $0x368] sm:$0xf0]  ;;  %v1774_v21 = vld [vmem:[%s2733_s1 + $0x354] sm:$0xf]  ;;  %v1581_v22 = vld [vmem:[%s2733_s1 + $0x358] sm:$0xf0] }
  0x49   :  { %935 = vmatpush.bf16.msra.mxu1 %v1272_v32  ;;  %v1718_v32 = vld [vmem:[%s2733_s1 + $0x194] sm:$0xf]  ;;  %v1592_v16 = vor.u32 %v1776_v9, %v1589_v10  ;;  %v1445_v26 = vld [vmem:[%s2733_s1 + $0x248] sm:$0xf0]  ;;  %v1584_v27 = vor.u32 %v1774_v21, %v1581_v22  ;;  %v1549_v10 = vld [vmem:[%s2733_s1 + $0x318] sm:$0xf0] }
  0x4a   :  { %948 = vmatpush.bf16.msra.mxu2 %v1336_v38  ;;  %v1357_v38 = vld [vmem:[%s2733_s1 + $0x198] sm:$0xf0]  ;;  %v1509_v28 = vld [vmem:[%s2733_s1 + $0x2c8] sm:$0xf0]  ;;  %v1766_v9 = vld [vmem:[%s2733_s1 + $0x314] sm:$0xf] }
  0x4b   :  { %961 = vmatpush.bf16.msra.mxu3 %v1400_v39  ;;  %v1668_v39 = vld [vmem:[%s2733_s1 + $0x4] sm:$0xf]  ;;  %v1360_v49 = vor.u32 %v1718_v32, %v1357_v38  ;;  %v1637_v38 = vld [vmem:[%s2733_s1 + $0x3c8] sm:$0xf0] }
  0x4c   :  { %923 = vmatpush.bf16.msra.mxu0 %v1200_v44  ;;  %v1221_v44 = vld [vmem:[%s2733_s1 + $0x88] sm:$0xf0]  ;;  %v1788_v32 = vld [vmem:[%s2733_s1 + $0x3c4] sm:$0xf] }
  0x4d   :  { %936 = vmatpush.bf16.msra.mxu1 %v1264_v51  ;;  %v1285_v51 = vld [vmem:[%s2733_s1 + $0x108] sm:$0xf0]  ;;  %v1224_v61 = vor.u32 %v1684_v42, %v1221_v44  ;;  %v1754_v44 = vld [vmem:[%s2733_s1 + $0x2b4] sm:$0xf]  ;;  %v1764_v21 = vld [vmem:[%s2733_s1 + $0x304] sm:$0xf] }
  0x4e   :  { %949 = vmatpush.bf16.msra.mxu2 %v1328_v52  ;;  %v1716_v52 = vld [vmem:[%s2733_s1 + $0x184] sm:$0xf]  ;;  %v1493_v58 = vld [vmem:[%s2733_s1 + $0x2a8] sm:$0xf0] }
  0x4f   :  { %962 = vmatpush.bf16.msra.mxu3 %v1392_v53  ;;  %v1160_v53 = vor.u32 %v1668_v39, %v1157_v40  ;;  %v1352_v2 = vor.u32 %v1716_v52, %v1349_v54  ;;  %v1738_v39 = vld [vmem:[%s2733_s1 + $0x234] sm:$0xf]  ;;  %v1437_v40 = vld [vmem:[%s2733_s1 + $0x238] sm:$0xf0]  ;;  %v1429_v54 = vld [vmem:[%s2733_s1 + $0x228] sm:$0xf0] }
  0x50   :  { %924 = vmatpush.bf16.msra.mxu0 %v1192_v57  ;;  %v1472_v57 = vor.u32 %v1746_v45, %v1469_v46  ;;  %v1501_v45 = vld [vmem:[%s2733_s1 + $0x2b8] sm:$0xf0]  ;;  %v1640_v46 = vor.u32 %v1788_v32, %v1637_v38  ;;  %v1557_v62 = vld [vmem:[%s2733_s1 + $0x328] sm:$0xf0]  ;;  %v1031_v32 = vld [vmem:[%s2734_s2 + $0x20] sm:$0xff] }
  0x51   :  { %937 = vmatpush.bf16.msra.mxu1 %v1256_v63  ;;  %v1744_v63 = vld [vmem:[%s2733_s1 + $0x264] sm:$0xf]  ;;  %v1629_v52 = vld [vmem:[%s2733_s1 + $0x3b8] sm:$0xf0]  ;;  %v1504_v55 = vor.u32 %v1754_v44, %v1501_v45  ;;  %v1541_v22 = vld [vmem:[%s2733_s1 + $0x308] sm:$0xf0] }
  0x52   :  { %950 = vmatpush.bf16.msra.mxu2 %v1320_v0  ;;  %v1461_v0 = vld [vmem:[%s2733_s1 + $0x268] sm:$0xf0]  ;;  %v1030_v38 = vld [vmem:[%s2734_s2 + $0x18] sm:$0xff] }
  0x53   :  { %963 = vmatpush.bf16.msra.mxu3 %v1384_v1  ;;  %v1288_v1 = vor.u32 %v1700_v50, %v1285_v51  ;;  %v1464_v8 = vor.u32 %v1744_v63, %v1461_v0  ;;  %v1565_v50 = vld [vmem:[%s2733_s1 + $0x338] sm:$0xf0]  ;;  %v1786_v51 = vld [vmem:[%s2733_s1 + $0x3b4] sm:$0xf]  ;;  %v1784_v63 = vld [vmem:[%s2733_s1 + $0x3a4] sm:$0xf] }
  0x54   :  { %925 = vmatpush.bf16.msra.mxu0 %v1184_v5  ;;  %v1760_v5 = vld [vmem:[%s2733_s1 + $0x2e4] sm:$0xf]  ;;  %v1632_v59 = vor.u32 %v1786_v51, %v1629_v52  ;;  %v1621_v0 = vld [vmem:[%s2733_s1 + $0x3a8] sm:$0xf0] }
  0x55   :  { %938 = vmatpush.bf16.msra.mxu1 %v1248_v11  ;;  %v1792_v11 = vld [vmem:[%s2733_s1 + $0x3e4] sm:$0xf]  ;;  %v1528_v15 = vor.u32 %v1760_v5, %v1525_v6  ;;  %v1750_v5 = vld [vmem:[%s2733_s1 + $0x294] sm:$0xf]  ;;  %v1485_v6 = vld [vmem:[%s2733_s1 + $0x298] sm:$0xf0] }
  0x56   :  { %951 = vmatpush.bf16.msra.mxu2 %v1312_v12  ;;  %v1653_v12 = vld [vmem:[%s2733_s1 + $0x3e8] sm:$0xf0] }
  0x57   :  { %964 = vmatpush.bf16.msra.mxu3 %v1376_v13  ;;  %v1742_v13 = vld [vmem:[%s2733_s1 + $0x254] sm:$0xf]  ;;  %v1656_v19 = vor.u32 %v1792_v11, %v1653_v12  ;;  %v1613_v12 = vld [vmem:[%s2733_s1 + $0x398] sm:$0xf0] }
  0x58   :  { %926 = vmatpush.bf16.msra.mxu0 %v1176_v17  ;;  %v1758_v17 = vld [vmem:[%s2733_s1 + $0x2d4] sm:$0xf]  ;;  %v1456_v20 = vor.u32 %v1742_v13, %v1453_v14  ;;  %v1732_v13 = vld [vmem:[%s2733_s1 + $0x204] sm:$0xf]  ;;  %v1413_v14 = vld [vmem:[%s2733_s1 + $0x208] sm:$0xf0] }
  0x59   :  { %939 = vmatpush.bf16.msra.mxu1 %v1240_v23  ;;  %v1790_v23 = vld [vmem:[%s2733_s1 + $0x3d4] sm:$0xf] }
  0x5a   :  { %952 = vmatpush.bf16.msra.mxu2 %v1304_v24  ;;  %v1645_v24 = vld [vmem:[%s2733_s1 + $0x3d8] sm:$0xf0]  ;;  %v1782_v11 = vld [vmem:[%s2733_s1 + $0x394] sm:$0xf] }
  0x5b   :  { %965 = vmatpush.bf16.msra.mxu3 %v1368_v25  ;;  %v1740_v25 = vld [vmem:[%s2733_s1 + $0x244] sm:$0xf] }
  0x5c   :  { %927 = vmatpush.bf16.msra.mxu0 %v1168_v30  ;;  %v1648_v30 = vor.u32 %v1790_v23, %v1645_v24  ;;  %v1448_v31 = vor.u32 %v1740_v25, %v1445_v26  ;;  %v1780_v23 = vld [vmem:[%s2733_s1 + $0x384] sm:$0xf]  ;;  %v1605_v24 = vld [vmem:[%s2733_s1 + $0x388] sm:$0xf0]  ;;  %v1042_v25 = vld [vmem:[%s2734_s2 + $0x78] sm:$0xff] }
  0x5d   :  { %940 = vmatpush.bf16.msra.mxu1 %v1232_v43 }
  0x5e   :  { %953 = vmatpush.bf16.msra.mxu2 %v1296_v47  ;;  %v1440_v47 = vor.u32 %v1738_v39, %v1437_v40  ;;  %v1029_v39 = vld [vmem:[%s2734_s2 + $0x10] sm:$0xff]  ;;  %v1028_v40 = vld [vmem:[%s2734_s2 + $0x8] sm:$0xff] }
  0x5f   :  { %966 = vmatpush.bf16.msra.mxu3 %v1360_v49  ;;  %v1770_v49 = vld [vmem:[%s2733_s1 + $0x334] sm:$0xf] }
  0x60   :  { %928 = vmatpush.bf16.msra.mxu0 %v1160_v53  ;;  %v1736_v53 = vld [vmem:[%s2733_s1 + $0x224] sm:$0xf]  ;;  %v1568_v56 = vor.u32 %v1770_v49, %v1565_v50 }
  0x61   :  { %941 = vmatpush.bf16.msra.mxu1 %v1224_v61  ;;  %v1432_v60 = vor.u32 %v1736_v53, %v1429_v54  ;;  %v1768_v61 = vld [vmem:[%s2733_s1 + $0x324] sm:$0xf] }
  0x62   :  { %954 = vmatpush.bf16.msra.mxu2 %v1288_v1  ;;  %v1734_v1 = vld [vmem:[%s2733_s1 + $0x214] sm:$0xf] }
  0x63   :  { %967 = vmatpush.bf16.msra.mxu3 %v1352_v2  ;;  %929 = vmatmul.bf16.vlgmr.msra.gmra.mxu0 %v2195_v36  ;;  %v1756_v36 = vld [vmem:[%s2733_s1 + $0x2c4] sm:$0xf]  ;;  %v1421_v2 = vld [vmem:[%s2733_s1 + $0x218] sm:$0xf0] }
  0x64   :  { %973 = vmatpush.bf16.msrb.mxu0 %v1472_v57  ;;  %942 = vmatmul.bf16.vlgmr.msra.gmra.mxu1 %v2206_v41  ;;  %v1573_v41 = vld [vmem:[%s2733_s1 + $0x348] sm:$0xf0]  ;;  %v1512_v42 = vor.u32 %v1756_v36, %v1509_v28  ;;  %v1752_v57 = vld [vmem:[%s2733_s1 + $0x2a4] sm:$0xf]  ;;  %v1041_v36 = vld [vmem:[%s2734_s2 + $0x70] sm:$0xff] }
  0x65   :  { %986 = vmatpush.bf16.msrb.mxu1 %v1536_v3  ;;  %955 = vmatmul.bf16.vlgmr.msra.gmra.mxu2 %v2193_v35  ;;  %v1520_v35 = vor.u32 %v1758_v17, %v1517_v18  ;;  %v1496_v3 = vor.u32 %v1752_v57, %v1493_v58  ;;  %v1748_v17 = vld [vmem:[%s2733_s1 + $0x284] sm:$0xf]  ;;  %v1616_v18 = vor.u32 %v1782_v11, %v1613_v12  ;;  %v1040_v28 = vld [vmem:[%s2734_s2 + $0x68] sm:$0xff] }
  0x66   :  { %999 = vmatpush.bf16.msrb.mxu2 %v1600_v4  ;;  %968 = vmatmul.bf16.vlgmr.msra.gmra.mxu3 %v2197_v37  ;;  %v1772_v37 = vld [vmem:[%s2733_s1 + $0x344] sm:$0xf]  ;;  %v1560_v4 = vor.u32 %v1768_v61, %v1557_v62 }
  0x67   :  { %1012 = vmatpush.bf16.msrb.mxu3 %v1664_v7  ;;  %v1576_v43 = vor.u32 %v1772_v37, %v1573_v41  ;;  %v1624_v7 = vor.u32 %v1784_v63, %v1621_v0  ;;  %v1033_v37 = vld [vmem:[%s2734_s2 + $0x30] sm:$0xff]  ;;  %v1032_v41 = vld [vmem:[%s2734_s2 + $0x28] sm:$0xff] }
  0x68   :  { %974 = vmatpush.bf16.msrb.mxu0 %v1464_v8  ;;  %v1424_v8 = vor.u32 %v1734_v1, %v1421_v2  ;;  %v1044_v2 = vld [vmem:[%s2734_s2 + $0x88] sm:$0xff] }
  0x69   :  { %987 = vmatpush.bf16.msrb.mxu1 %v1528_v15  ;;  %v1488_v15 = vor.u32 %v1750_v5, %v1485_v6  ;;  %v1043_v5 = vld [vmem:[%s2734_s2 + $0x80] sm:$0xff] }
  0x6a   :  { %1000 = vmatpush.bf16.msrb.mxu2 %v1592_v16  ;;  %v1552_v16 = vor.u32 %v1766_v9, %v1549_v10 }
  0x6b   :  { %1013 = vmatpush.bf16.msrb.mxu3 %v1656_v19  ;;  %v1416_v19 = vor.u32 %v1732_v13, %v1413_v14 }
  0x6c   :  { %975 = vmatpush.bf16.msrb.mxu0 %v1456_v20  ;;  %v1477_v20 = vld [vmem:[%s2733_s1 + $0x288] sm:$0xf0] }
  0x6d   :  { %988 = vmatpush.bf16.msrb.mxu1 %v1520_v35  ;;  %v1480_v26 = vor.u32 %v1748_v17, %v1477_v20  ;;  %v1544_v35 = vor.u32 %v1764_v21, %v1541_v22 }
  0x6e   :  { %1001 = vmatpush.bf16.msrb.mxu2 %v1584_v27  ;;  %v1608_v27 = vor.u32 %v1780_v23, %v1605_v24 }
  0x6f   :  { %1014 = vmatpush.bf16.msrb.mxu3 %v1648_v30  ;;  %v1039_v30 = vld [vmem:[%s2734_s2 + $0x60] sm:$0xff] }
  0x70   :  { %976 = vmatpush.bf16.msrb.mxu0 %v1448_v31  ;;  %v1034_v31 = vld [vmem:[%s2734_s2 + $0x38] sm:$0xff] }
  0x71   :  { %989 = vmatpush.bf16.msrb.mxu1 %v1512_v42  ;;  %v1027_v42 = vld [vmem:[%s2734_s2] sm:$0xff] }
  0x72   :  { %1002 = vmatpush.bf16.msrb.mxu2 %v1576_v43 }
  0x73   :  { %1015 = vmatpush.bf16.msrb.mxu3 %v1640_v46 }
  0x74   :  { %977 = vmatpush.bf16.msrb.mxu0 %v1440_v47 }
  0x75   :  { %990 = vmatpush.bf16.msrb.mxu1 %v1504_v55 }
  0x76   :  { %1003 = vmatpush.bf16.msrb.mxu2 %v1568_v56 }
  0x77   :  { %1016 = vmatpush.bf16.msrb.mxu3 %v1632_v59 }
  0x78   :  { %978 = vmatpush.bf16.msrb.mxu0 %v1432_v60 }
  0x79   :  { %991 = vmatpush.bf16.msrb.mxu1 %v1496_v3 }
  0x7a   :  { %1004 = vmatpush.bf16.msrb.mxu2 %v1560_v4 }
  0x7b   :  { %1017 = vmatpush.bf16.msrb.mxu3 %v1624_v7 }
  0x7c   :  { %979 = vmatpush.bf16.msrb.mxu0 %v1424_v8 }
  0x7d   :  { %992 = vmatpush.bf16.msrb.mxu1 %v1488_v15 }
  0x7e   :  { %1005 = vmatpush.bf16.msrb.mxu2 %v1552_v16 }
  0x7f   :  { %1018 = vmatpush.bf16.msrb.mxu3 %v1616_v18 }
  0x80   :  { %980 = vmatpush.bf16.msrb.mxu0 %v1416_v19 }
  0x81   :  { %993 = vmatpush.bf16.msrb.mxu1 %v1480_v26 }
  0x82   :  { %1006 = vmatpush.bf16.msrb.mxu2 %v1544_v35 }
  0x83   :  { %1019 = vmatpush.bf16.msrb.mxu3 %v1608_v27  ;;  %981 = vmatmul.bf16.vlgmr.msrb.gmra.mxu0 %v2321_v33  ;;  %v1038_v33 = vld [vmem:[%s2734_s2 + $0x58] sm:$0xff] }
  0x84   :  { %1049 = vmatpush.msra.mxu0 %v1042_v25  ;;  %994 = vmatmul.bf16.vlgmr.msrb.gmra.mxu1 %v2346_v48  ;;  %v1035_v48 = vld [vmem:[%s2734_s2 + $0x40] sm:$0xff] }
  0x85   :  { %1007 = vmatmul.bf16.vlgmr.msrb.gmra.mxu2 %v2313_v29  ;;  %v1037_v29 = vld [vmem:[%s2734_s2 + $0x50] sm:$0xff]  ;;  %1083 = vmatpush.msra.mxu1 %v1044_v2 }
  0x86   :  { %1050 = vmatpush.msra.mxu0 %v1041_v36  ;;  %1020 = vmatmul.bf16.vlgmr.msrb.gmra.mxu3 %v2323_v34  ;;  %v1036_v34 = vld [vmem:[%s2734_s2 + $0x48] sm:$0xff] }
  0x87   :  { %1084 = vmatpush.msra.mxu1 %v1043_v5 }
  0x88   :  { %1051 = vmatpush.msra.mxu0 %v1040_v28  ;;  %v1091_v28 = vld [vmem:[%s2735_s3 + $0x8] sm:$0xff] }
  0x89   :  { %1109 = vmatpush.msra.mxu2 %v1091_v28 }
  0x8a   :  { %1052 = vmatpush.msra.mxu0 %v1039_v30  ;;  %v1090_v30 = vld [vmem:[%s2735_s3] sm:$0xff] }
  0x8b   :  { %1110 = vmatpush.msra.mxu2 %v1090_v30 }
  0x8c   :  { %1053 = vmatpush.msra.mxu0 %v1038_v33 }
  0x8e   :  { %1054 = vmatpush.msra.mxu0 %v1037_v29 }
  0x90   :  { %1055 = vmatpush.msra.mxu0 %v1036_v34 }
  0x92   :  { %1056 = vmatpush.msra.mxu0 %v1035_v48 }
  0x94   :  { %1057 = vmatpush.msra.mxu0 %v1034_v31 }
  0x96   :  { %1058 = vmatpush.msra.mxu0 %v1033_v37 }
  0x98   :  { %1059 = vmatpush.msra.mxu0 %v1032_v41 }
  0x9a   :  { %1060 = vmatpush.msra.mxu0 %v1031_v32 }
  0x9c   :  { %1061 = vmatpush.msra.mxu0 %v1030_v38 }
  0x9e   :  { %1062 = vmatpush.msra.mxu0 %v1029_v39 }
  0xa0   :  { %1063 = vmatpush.msra.mxu0 %v1028_v40 }
  0xa2   :  { %1064 = vmatpush.msra.mxu0 %v1027_v42 }
  0xa7   :  { %v826_v43 = vpop.f32.mrf.mxu0 }
  0xab   :  { %v839_v44 = vpop.f32.mrf.mxu1 }
  0xac   :  { %v840_v47 = vadd.f32 %v839_v44, %v826_v43 }
  0xae   :  { %v852_v45 = vpop.f32.mrf.mxu2 }
  0xaf   :  { %v865_v46 = vpop.f32.mrf.mxu3  ;;  %v828_v49 = vpop.f32.mrf.mxu0  ;;  %v853_v51 = vadd.f32 %v852_v45, %v840_v47 }
  0xb1   :  { %v866_v54 = vadd.f32 %v865_v46, %v853_v51 }
  0xb3   :  { %v841_v50 = vpop.f32.mrf.mxu1 }
  0xb6   :  { %v854_v52 = vpop.f32.mrf.mxu2 }
  0xb7   :  { %v867_v53 = vpop.f32.mrf.mxu3 }
  0xc0   :  { %v878_v55 = vpop.f32.mrf.mxu0 }
  0xc1   :  { %v879_v56 = vadd.f32 %v878_v55, %v866_v54  ;;  %v891_v57 = vpop.f32.mrf.mxu1 }
  0xc3   :  { %v892_v58 = vadd.f32 %v891_v57, %v879_v56 }
  0xc8   :  { %v904_v59 = vpop.f32.mrf.mxu2  ;;  %v880_v63 = vpop.f32.mrf.mxu0 }
  0xc9   :  { %v905_v60 = vadd.f32 %v904_v59, %v892_v58  ;;  %v917_v61 = vpop.f32.mrf.mxu3  ;;  %v893_v1 = vpop.f32.mrf.mxu1 }
  0xcb   :  { %v918_v62 = vadd.f32 %v917_v61, %v905_v60 }
  0xcd   :  { %v1025_v0 = vmax.f32 %v918_v62, 0.0 }
  0xcf   :  { %1065 = vmatmul.f32.vlgmr.msra.gmra.mxu0 %v1025_v0 }
  0xd0   :  { %v906_v3 = vpop.f32.mrf.mxu2 }
  0xd1   :  { %v919_v4 = vpop.f32.mrf.mxu3 }
  0xe0   :  { %v930_v6 = vpop.f32.mrf.mxu0 }
  0xe1   :  { %v943_v7 = vpop.f32.mrf.mxu1 }
  0xe2   :  { %v944_v14 = vadd.f32 %v943_v7, %v930_v6 }
  0xe8   :  { %v956_v8 = vpop.f32.mrf.mxu2  ;;  %v932_v10 = vpop.f32.mrf.mxu0 }
  0xe9   :  { %v969_v9 = vpop.f32.mrf.mxu3  ;;  %v945_v11 = vpop.f32.mrf.mxu1  ;;  %v957_v15 = vadd.f32 %v956_v8, %v944_v14 }
  0xeb   :  { %v970_v17 = vadd.f32 %v969_v9, %v957_v15 }
  0xf0   :  { %v958_v12 = vpop.f32.mrf.mxu2 }
  0xf1   :  { %v971_v13 = vpop.f32.mrf.mxu3 }
 0x100   :  { %v982_v16 = vpop.f32.mrf.mxu0 }
 0x101   :  { %v995_v18 = vpop.f32.mrf.mxu1  ;;  %v983_v19 = vadd.f32 %v982_v16, %v970_v17 }
 0x103   :  { %v996_v20 = vadd.f32 %v995_v18, %v983_v19 }
 0x108   :  { %v1008_v21 = vpop.f32.mrf.mxu2  ;;  %v984_v22 = vpop.f32.mrf.mxu0 }
 0x109   :  { %v1009_v23 = vadd.f32 %v1008_v21, %v996_v20  ;;  %v1021_v24 = vpop.f32.mrf.mxu3  ;;  %v997_v25 = vpop.f32.mrf.mxu1 }
 0x10b   :  { %v1022_v26 = vadd.f32 %v1021_v24, %v1009_v23 }
 0x10d   :  { %v1026_v35 = vmax.f32 %v1022_v26, 0.0 }
 0x10f   :  { %1665 = vmatmul.msk.f32.vlgmr.msra.gmra.mxu1 %vm1045_vm0, %v1026_v35 }
 0x110   :  { %v1010_v27 = vpop.f32.mrf.mxu2 }
 0x111   :  { %v1023_v36 = vpop.f32.mrf.mxu3 }
 0x14c   :  { %v1066_v33 = vpop.f32.mrf.mxu0 }
 0x18c   :  { %v1086_v29 = vpop.f32.mrf.mxu1 }
 0x18d   :  { %v1087_v34 = vadd.f32 %v1086_v29, %v1066_v33 }
 0x18f   :  { %v1089_v48 = vmax.f32 %v1087_v34, 0.0 }
 0x191   :  { %1666 = vmatmul.msk.f32.vlgmr.msra.gmra.mxu2 %vm1045_vm0, %v1089_v48 }
 0x214   :  { %v1112_v31 = vpop.f32.mrf.mxu2 }
 0x215   :  { %v1667_v37 = vmul.f32 -1.442695, %v1112_v31 }
 0x217   :  { %1799 = vpow2.f32 %v1667_v37 }
 0x21d   :  { %v1800_v41 = vpop.eup %1799 }
 0x21e   :  { %v1118_v32 = vadd.f32 1.0, %v1800_v41 }
 0x220   :  { %1801 = vrcp.f32 %v1118_v32  ;;  %v1130_v42 = vand.u32 2147483648, %v1118_v32  ;;  %v1128_v44 = vand.u32 2147483647, %v1118_v32  ;;  %vm1124_vm2 = vweird.f32 %v1118_v32 }
 0x222   :  { %v1131_v46 = vor.u32 1.1754944e-38, %v1130_v42  ;;  %vm1129_vm4 = vcmp.eq.f32.partialorder %v1128_v44, 8.507059e+37 }
 0x226   :  { %v1802_v38 = vpop.eup %1801 }
 0x227   :  { %v1120_v39 = vmul.f32 %v1802_v38, %v1118_v32  ;;  %vm1125_vm1 = vweird.f32 %v1802_v38 }
 0x228   :  { %vm1126_vm3 = vmor %vm1124_vm2, %vm1125_vm1 }
 0x229   :  { %v1121_v40 = vsub.f32 1.0, %v1120_v39 }
 0x22b   :  { %v1122_v43 = vmul.f32 %v1802_v38, %v1121_v40 }
 0x22d   :  { %v1123_v45 = vadd.f32 %v1802_v38, %v1122_v43 }
 0x22f   :  { %v1127_v47 = vsel %vm1126_vm3, %v1802_v38, %v1123_v45 }
 0x230   :  { %v1132_v49 = vsel %vm1129_vm4, %v1131_v46, %v1127_v47 }
 0x231   :  { %1134 = vst [vmem:[#allocation2] sm:$0xff] %v1132_v49 }
 0x232   :  { %1138 = vsyncadd [#allocation3], 96  ;;  %s1141_s13 = sshll.u32 %s2736_s4, 4  ;;  %s1829_s14 = smov [#allocation2]   ;;  %s1142_s13 = int_to_ptr.hbm [resolvable:$true] %s1141_s13 }
 0x233   :  { %s1139_s15 = sshll.u32 %s1829_s14, 4  ;;  %s1830_s16 = smov 32   ;;  %s1140_s15 = int_to_ptr.vmem [resolvable:$true] %s1139_s15 }
 0x234   :  { %s1831_s17 = smov 2  }
 0x235   :  { %1147 = dma.vmem_to_hbm [thread:$0]  %s1140_s15, 32, %s1142_s13, [#allocation3], %s1830_s16, %s1830_s16, %s1831_s17  }
 0x236   :  { %1827 = dma.done.wait [#allocation3], 128  }
 0x237   :  { %1828 = vsyncadd [#allocation3], 4294967168 }
 0x238   :  { %1152 = vsyncpa [#allocation3], 1 }

</bundles_post_ra>
